<compile_context>
chip_gen: v7x
topology: tpu7x:2x2x1
jax: 0.10.0
libtpu: 0.0.40
codegen_flags: <defaults>
</compile_context>

<pallas_src>
import functools

import jax
import jax.numpy as jnp
from jax.experimental import pallas as pl
from jax.experimental.pallas import tpu as pltpu

NEG_SLOPE = 0.2
BN_EPS = 1e-5


def _leaky_relu(x):
    return jnp.where(x >= 0, x, NEG_SLOPE * x)


# ---------------------------------------------------------------- kernel ----

def _fused_kernel(a1_ref, w1_ref, w2_ref, gamma_ref, beta_ref, wl_ref, bl_ref,
                  o_ref, *, n_batch, hw2, c2):
    rows2 = n_batch * hw2                       # conv2 output rows = (n, oh, ow)

    # conv1 (+LeakyReLU): one bf16 MXU matmul over all 9*rows2 patch rows.
    y1 = _leaky_relu(
        jnp.dot(a1_ref[...], w1_ref[...], preferred_element_type=jnp.float32)
    )                                           # [9*rows2, c1] f32

    # conv2 as ONE K = 9*c1 matmul: lane-concatenate the 9 contiguous per-tap
    # row blocks of y1 into the conv2 im2col [rows2, 9*c1] (static, tile-
    # aligned slices -> vreg relabeling, no sublane shuffles), then a single
    # bf16 MXU dot against the host-stacked [9*c1, c2] weight.
    y1g = jnp.concatenate(
        [y1[t * rows2:(t + 1) * rows2, :] for t in range(9)], axis=1
    ).astype(jnp.bfloat16)                      # [rows2, 9*c1] bf16
    acc = jnp.dot(y1g, w2_ref[...], preferred_element_type=jnp.float32)  # [rows2, c2]

    # BatchNorm2d: training-mode batch statistics, biased variance, centered.
    inv_n = 1.0 / rows2
    mean = jnp.sum(acc, axis=0, keepdims=True) * inv_n                   # [1, c2]
    cen = acc - mean
    var = jnp.sum(cen * cen, axis=0, keepdims=True) * inv_n              # [1, c2]
    h2 = gamma_ref[...] * (cen * jax.lax.rsqrt(var + BN_EPS)) + beta_ref[...]
    h2 = _leaky_relu(h2)                                                 # [rows2, c2]

    # Flatten + Dropout(0.4) -> identity (eval semantics).
    # TODO(synk): training-mode Dropout(0.4) (random mask + 1/0.6 scale) omitted.

    # Linear(c2*hw2 -> 1) + Sigmoid: VPU multiply against the un-tiled
    # [1, hw2, c2] weight, then two small reductions (no one-hot matmul).
    prod = h2.reshape(n_batch, hw2, c2) * wl_ref[...]                    # [N,hw2,c2]
    s = jnp.sum(prod, axis=2)                                            # [N, hw2]
    logits = jnp.sum(s, axis=1, keepdims=True) + bl_ref[0]               # [N, 1]
    o_ref[...] = jax.nn.sigmoid(logits)


# ------------------------------------------------------------- host glue ----

def _conv1_patches_per_tap(x, k=3, stride=2, pad=1):
    """Conv1 im2col patches grouped (tap-major) by conv2 tap.

    Returns [(k*k) * N * Ho2 * Wo2, C*k*k]: row block t = kh*k + kw holds, for
    every conv2 output position (n, oh, ow), the conv1 *input* patch of the
    conv1-output position that conv2's tap (kh, kw) reads, or zeros where that
    position falls in conv2's padding.  Column order is (c, kh, kw), matching
    w.reshape(c_out, -1)."""
    N, C, H, W = x.shape
    xp = jnp.pad(x, ((0, 0), (0, 0), (pad, pad), (pad, pad)))
    ho1 = (H + 2 * pad - k) // stride + 1
    wo1 = (W + 2 * pad - k) // stride + 1
    cols = []
    for di in range(k):
        for dj in range(k):
            cols.append(xp[:, :, di:di + stride * ho1:stride,
                           dj:dj + stride * wo1:stride])
    p = jnp.stack(cols, axis=2)                          # [N, C, k*k, Ho1, Wo1]
    p = p.transpose(0, 3, 4, 1, 2).reshape(N, ho1, wo1, C * k * k)
    # Zero ring = conv2's spatial padding (zero patch -> zero conv1 output,
    # exact because conv1 has bias=False).
    pp = jnp.pad(p, ((0, 0), (pad, pad), (pad, pad), (0, 0)))
    ho2 = (ho1 + 2 * pad - k) // stride + 1
    wo2 = (wo1 + 2 * pad - k) // stride + 1
    taps = []
    for kh in range(k):
        for kw in range(k):
            taps.append(pp[:, kh:kh + stride * ho2:stride,
                           kw:kw + stride * wo2:stride, :])
    a = jnp.stack(taps, axis=0)                          # [k*k, N, Ho2, Wo2, CK]
    return a.reshape(k * k * N * ho2 * wo2, C * k * k), ho2, wo2


def discriminator_forward(x, w1, w2, gamma, beta, wl, bl):
    """x: [N, Cin, H, W] (NCHW, like PyTorch).  Returns [N, 1] sigmoid scores."""
    N, cin = x.shape[0], x.shape[1]
    c1, c2 = w1.shape[0], w2.shape[0]

    # One-time host-side layout prep (tiny tensors; no inter-stage glue).
    a1, ho2, wo2 = _conv1_patches_per_tap(x)             # [9*N*ho2*wo2, Cin*9]
    hw2 = ho2 * wo2
    kdim = cin * 9
    kpad = ((kdim + 7) // 8) * 8                         # 27 -> 32
    a1 = jnp.pad(a1, ((0, 0), (0, kpad - kdim))).astype(jnp.bfloat16)
    w1m = jnp.pad(w1.reshape(c1, kdim).T,
                  ((0, kpad - kdim), (0, 0))).astype(jnp.bfloat16)       # [kpad, c1]
    # conv2 weight stacked tap-major along K: K index = tap*c1 + cin.
    w2m = w2.transpose(2, 3, 1, 0).reshape(9 * c1, c2).astype(jnp.bfloat16)
    # PyTorch Flatten is NCHW: wl[:, c*hw2 + s]; permute once to [s, c].
    wlr = wl.reshape(c2, hw2).T.reshape(1, hw2, c2)      # [1, hw2, c2] f32
    gammar = gamma.reshape(1, c2)
    betar = beta.reshape(1, c2)
    blr = bl.reshape(1)                                  # scalar -> SMEM

    kern = functools.partial(_fused_kernel, n_batch=N, hw2=hw2, c2=c2)

    def vspec(shape):
        nd = len(shape)
        return pl.BlockSpec(shape, lambda i, nd=nd: (0,) * nd)

    vmem_args = (a1, w1m, w2m, gammar, betar, wlr)
    out = pl.pallas_call(
        kern,
        out_shape=jax.ShapeDtypeStruct((N, 1), jnp.float32),
        grid=(1,),
        in_specs=[vspec(a.shape) for a in vmem_args]
                 + [pl.BlockSpec(memory_space=pltpu.MemorySpace.SMEM)],
        out_specs=vspec((N, 1)),
        compiler_params=pltpu.CompilerParams(
            dimension_semantics=("arbitrary",)),
    )(*vmem_args, blr)
    return out


# ------------------------------------------------------------------- main ---

if __name__ == "__main__":
    N, in_img_s, greyscale = 2, 16, False
    out_img_s = in_img_s // 4        # two stride-2 convs: 16 -> 8 -> 4
    Cin = 1 if greyscale else 3

    key = jax.random.PRNGKey(0)
    k1, k2, k3, k4, k5, kx = jax.random.split(key, 6)

    # Deterministic synthetic parameters (shapes from the module __init__).
    w1 = 0.05 * jax.random.normal(k1, (128, Cin, 3, 3), jnp.float32)      # Conv2d
    w2 = 0.05 * jax.random.normal(k2, (256, 128, 3, 3), jnp.float32)      # Conv2d
    gamma = 1.0 + 0.1 * jax.random.normal(k3, (256,), jnp.float32)        # BN weight
    beta = 0.1 * jax.random.normal(k4, (256,), jnp.float32)               # BN bias
    wl = 0.05 * jax.random.normal(k5, (1, 256 * out_img_s * out_img_s), jnp.float32)
    bl = jnp.zeros((1,), jnp.float32)                                     # Linear bias

    x = jax.random.normal(kx, (N, Cin, in_img_s, in_img_s), jnp.float32)

    fwd = jax.jit(discriminator_forward)
    out = fwd(x, w1, w2, gamma, beta, wl, bl)
    jax.block_until_ready(out)
    assert out.shape == (N, 1)
    assert bool(jnp.all((out >= 0.0) & (out <= 1.0)))
    print("KERNEL_OK")
</pallas_src>

<mosaic_0001>
module attributes {stable_mosaic.version = 11 : i64} {
  func.func @_fused_kernel(%arg0: i32, %arg1: memref<288x32xbf16, #tpu.memory_space<vmem>>, %arg2: memref<32x128xbf16, #tpu.memory_space<vmem>>, %arg3: memref<1152x256xbf16, #tpu.memory_space<vmem>>, %arg4: memref<1x256xf32, #tpu.memory_space<vmem>>, %arg5: memref<1x256xf32, #tpu.memory_space<vmem>>, %arg6: memref<1x16x256xf32, #tpu.memory_space<vmem>>, %arg7: memref<1xf32, #tpu.memory_space<smem>>, %arg8: memref<2x1xf32, #tpu.memory_space<vmem>>) attributes {dimension_semantics = [#tpu.dimension_semantics<arbitrary>], iteration_bounds = array<i64: 1>, scalar_prefetch = 0 : i64, scratch_operands = 0 : i64, tpu.core_type = #tpu.core_type<tc>, window_params = [{pipeline_mode = #tpu.pipeline_mode<synchronous>, transform_indices = @transform_0, window_bounds = array<i64: 288, 32>}, {pipeline_mode = #tpu.pipeline_mode<synchronous>, transform_indices = @transform_1, window_bounds = array<i64: 32, 128>}, {pipeline_mode = #tpu.pipeline_mode<synchronous>, transform_indices = @transform_2, window_bounds = array<i64: 1152, 256>}, {pipeline_mode = #tpu.pipeline_mode<synchronous>, transform_indices = @transform_3, window_bounds = array<i64: 1, 256>}, {pipeline_mode = #tpu.pipeline_mode<synchronous>, transform_indices = @transform_4, window_bounds = array<i64: 1, 256>}, {pipeline_mode = #tpu.pipeline_mode<synchronous>, transform_indices = @transform_5, window_bounds = array<i64: 1, 16, 256>}, {transform_indices = @transform_6, window_bounds = array<i64: 1>}, {pipeline_mode = #tpu.pipeline_mode<synchronous>, transform_indices = @transform_7, window_bounds = array<i64: 2, 1>}]} {
    %c0 = arith.constant 0 : index
    %c0_0 = arith.constant 0 : index
    %0 = vector.load %arg1[%c0, %c0_0] : memref<288x32xbf16, #tpu.memory_space<vmem>>, vector<288x32xbf16>
    %c0_1 = arith.constant 0 : index
    %c0_2 = arith.constant 0 : index
    %1 = vector.load %arg2[%c0_1, %c0_2] : memref<32x128xbf16, #tpu.memory_space<vmem>>, vector<32x128xbf16>
    %cst = arith.constant dense<0.000000e+00> : vector<288x128xf32>
    %2 = tpu.matmul %0, %1, %cst {dimension_numbers = #tpu.dot_dimension_numbers<[1], [0], [0], [1], [0, 0, 1, 1], [], []>} : vector<288x32xbf16>, vector<32x128xbf16>, vector<288x128xf32> -> vector<288x128xf32>
    %cst_3 = arith.constant 0.000000e+00 : f32
    %3 = vector.broadcast %cst_3 : f32 to vector<288x128xf32>
    %4 = arith.cmpf oge, %2, %3 : vector<288x128xf32>
    %cst_4 = arith.constant 2.000000e-01 : f32
    %5 = vector.broadcast %cst_4 : f32 to vector<288x128xf32>
    %6 = arith.mulf %5, %2 : vector<288x128xf32>
    %7 = arith.select %4, %2, %6 : vector<288x128xi1>, vector<288x128xf32>
    %8 = vector.extract_strided_slice %7 {offsets = [0, 0], sizes = [32, 128], strides = [1, 1]} : vector<288x128xf32> to vector<32x128xf32>
    %9 = vector.extract_strided_slice %7 {offsets = [32, 0], sizes = [32, 128], strides = [1, 1]} : vector<288x128xf32> to vector<32x128xf32>
    %10 = vector.extract_strided_slice %7 {offsets = [64, 0], sizes = [32, 128], strides = [1, 1]} : vector<288x128xf32> to vector<32x128xf32>
    %11 = vector.extract_strided_slice %7 {offsets = [96, 0], sizes = [32, 128], strides = [1, 1]} : vector<288x128xf32> to vector<32x128xf32>
    %12 = vector.extract_strided_slice %7 {offsets = [128, 0], sizes = [32, 128], strides = [1, 1]} : vector<288x128xf32> to vector<32x128xf32>
    %13 = vector.extract_strided_slice %7 {offsets = [160, 0], sizes = [32, 128], strides = [1, 1]} : vector<288x128xf32> to vector<32x128xf32>
    %14 = vector.extract_strided_slice %7 {offsets = [192, 0], sizes = [32, 128], strides = [1, 1]} : vector<288x128xf32> to vector<32x128xf32>
    %15 = vector.extract_strided_slice %7 {offsets = [224, 0], sizes = [32, 128], strides = [1, 1]} : vector<288x128xf32> to vector<32x128xf32>
    %16 = vector.extract_strided_slice %7 {offsets = [256, 0], sizes = [32, 128], strides = [1, 1]} : vector<288x128xf32> to vector<32x128xf32>
    %17 = tpu.concatenate %8, %9, %10, %11, %12, %13, %14, %15, %16 in 1 : vector<32x128xf32>, vector<32x128xf32>, vector<32x128xf32>, vector<32x128xf32>, vector<32x128xf32>, vector<32x128xf32>, vector<32x128xf32>, vector<32x128xf32>, vector<32x128xf32> -> vector<32x1152xf32>
    %18 = arith.truncf %17 : vector<32x1152xf32> to vector<32x1152xbf16>
    %c0_5 = arith.constant 0 : index
    %c0_6 = arith.constant 0 : index
    %19 = vector.load %arg3[%c0_5, %c0_6] : memref<1152x256xbf16, #tpu.memory_space<vmem>>, vector<1152x256xbf16>
    %cst_7 = arith.constant dense<0.000000e+00> : vector<32x256xf32>
    %20 = tpu.matmul %18, %19, %cst_7 {dimension_numbers = #tpu.dot_dimension_numbers<[1], [0], [0], [1], [0, 0, 1, 1], [], []>} : vector<32x1152xbf16>, vector<1152x256xbf16>, vector<32x256xf32> -> vector<32x256xf32>
    %cst_8 = arith.constant dense<0.000000e+00> : vector<256xf32>
    %21 = vector.multi_reduction <add>, %20, %cst_8 [0] : vector<32x256xf32> to vector<256xf32>
    %22 = vector.shape_cast %21 : vector<256xf32> to vector<1x256xf32>
    %cst_9 = arith.constant 3.125000e-02 : f32
    %23 = vector.broadcast %cst_9 : f32 to vector<1x256xf32>
    %24 = arith.mulf %22, %23 : vector<1x256xf32>
    %25 = vector.broadcast %24 : vector<1x256xf32> to vector<32x256xf32>
    %26 = arith.subf %20, %25 : vector<32x256xf32>
    %27 = arith.mulf %26, %26 : vector<32x256xf32>
    %cst_10 = arith.constant dense<0.000000e+00> : vector<256xf32>
    %28 = vector.multi_reduction <add>, %27, %cst_10 [0] : vector<32x256xf32> to vector<256xf32>
    %29 = vector.shape_cast %28 : vector<256xf32> to vector<1x256xf32>
    %cst_11 = arith.constant 3.125000e-02 : f32
    %30 = vector.broadcast %cst_11 : f32 to vector<1x256xf32>
    %31 = arith.mulf %29, %30 : vector<1x256xf32>
    %c0_12 = arith.constant 0 : index
    %c0_13 = arith.constant 0 : index
    %32 = vector.load %arg4[%c0_12, %c0_13] : memref<1x256xf32, #tpu.memory_space<vmem>>, vector<1x256xf32>
    %cst_14 = arith.constant 9.99999974E-6 : f32
    %33 = vector.broadcast %cst_14 : f32 to vector<1x256xf32>
    %34 = arith.addf %31, %33 : vector<1x256xf32>
    %35 = math.rsqrt %34 : vector<1x256xf32>
    %36 = vector.broadcast %35 : vector<1x256xf32> to vector<32x256xf32>
    %37 = arith.mulf %26, %36 : vector<32x256xf32>
    %38 = vector.broadcast %32 : vector<1x256xf32> to vector<32x256xf32>
    %39 = arith.mulf %38, %37 : vector<32x256xf32>
    %c0_15 = arith.constant 0 : index
    %c0_16 = arith.constant 0 : index
    %40 = vector.load %arg5[%c0_15, %c0_16] : memref<1x256xf32, #tpu.memory_space<vmem>>, vector<1x256xf32>
    %41 = vector.broadcast %40 : vector<1x256xf32> to vector<32x256xf32>
    %42 = arith.addf %39, %41 : vector<32x256xf32>
    %cst_17 = arith.constant 0.000000e+00 : f32
    %43 = vector.broadcast %cst_17 : f32 to vector<32x256xf32>
    %44 = arith.cmpf oge, %42, %43 : vector<32x256xf32>
    %cst_18 = arith.constant 2.000000e-01 : f32
    %45 = vector.broadcast %cst_18 : f32 to vector<32x256xf32>
    %46 = arith.mulf %45, %42 : vector<32x256xf32>
    %47 = arith.select %44, %42, %46 : vector<32x256xi1>, vector<32x256xf32>
    %48 = vector.shape_cast %47 : vector<32x256xf32> to vector<2x16x256xf32>
    %c0_19 = arith.constant 0 : index
    %c0_20 = arith.constant 0 : index
    %c0_21 = arith.constant 0 : index
    %49 = vector.load %arg6[%c0_19, %c0_20, %c0_21] : memref<1x16x256xf32, #tpu.memory_space<vmem>>, vector<1x16x256xf32>
    %50 = vector.broadcast %49 : vector<1x16x256xf32> to vector<2x16x256xf32>
    %51 = arith.mulf %48, %50 : vector<2x16x256xf32>
    %cst_22 = arith.constant dense<0.000000e+00> : vector<2x16xf32>
    %52 = vector.multi_reduction <add>, %51, %cst_22 [2] : vector<2x16x256xf32> to vector<2x16xf32>
    %cst_23 = arith.constant dense<0.000000e+00> : vector<2xf32>
    %53 = vector.multi_reduction <add>, %52, %cst_23 [1] : vector<2x16xf32> to vector<2xf32>
    %54 = vector.shape_cast %53 : vector<2xf32> to vector<2x1xf32>
    %c0_24 = arith.constant 0 : index
    %55 = memref.load %arg7[%c0_24] : memref<1xf32, #tpu.memory_space<smem>>
    %56 = vector.broadcast %55 : f32 to vector<2x1xf32>
    %57 = arith.addf %54, %56 : vector<2x1xf32>
    %58 = arith.negf %57 : vector<2x1xf32>
    %59 = math.exp %58 : vector<2x1xf32>
    %cst_25 = arith.constant 1.000000e+00 : f32
    %60 = vector.broadcast %cst_25 : f32 to vector<2x1xf32>
    %61 = arith.addf %60, %59 : vector<2x1xf32>
    %62 = arith.divf %60, %61 : vector<2x1xf32>
    %c0_26 = arith.constant 0 : index
    %c0_27 = arith.constant 0 : index
    %63 = vector.load %arg8[%c0_26, %c0_27] : memref<2x1xf32, #tpu.memory_space<vmem>>, vector<2x1xf32>
    tpu.vector_store %arg8[%c0_26, %c0_27], %62 {strides = array<i32>} : memref<2x1xf32, #tpu.memory_space<vmem>>, vector<2x1xf32>,
    return
  }
  func.func @transform_0(%arg0: i32) -> (i32, i32) {
    %c0_i32 = arith.constant 0 : i32
    %c0_i32_0 = arith.constant 0 : i32
    %c0_i32_1 = arith.constant 0 : i32
    return %c0_i32, %c0_i32_0 : i32, i32
  }
  func.func @transform_1(%arg0: i32) -> (i32, i32) {
    %c0_i32 = arith.constant 0 : i32
    %c0_i32_0 = arith.constant 0 : i32
    %c0_i32_1 = arith.constant 0 : i32
    return %c0_i32, %c0_i32_0 : i32, i32
  }
  func.func @transform_2(%arg0: i32) -> (i32, i32) {
    %c0_i32 = arith.constant 0 : i32
    %c0_i32_0 = arith.constant 0 : i32
    %c0_i32_1 = arith.constant 0 : i32
    return %c0_i32, %c0_i32_0 : i32, i32
  }
  func.func @transform_3(%arg0: i32) -> (i32, i32) {
    %c0_i32 = arith.constant 0 : i32
    %c0_i32_0 = arith.constant 0 : i32
    %c0_i32_1 = arith.constant 0 : i32
    return %c0_i32, %c0_i32_0 : i32, i32
  }
  func.func @transform_4(%arg0: i32) -> (i32, i32) {
    %c0_i32 = arith.constant 0 : i32
    %c0_i32_0 = arith.constant 0 : i32
    %c0_i32_1 = arith.constant 0 : i32
    return %c0_i32, %c0_i32_0 : i32, i32
  }
  func.func @transform_5(%arg0: i32) -> (i32, i32, i32) {
    %c0_i32 = arith.constant 0 : i32
    %c0_i32_0 = arith.constant 0 : i32
    %c0_i32_1 = arith.constant 0 : i32
    %c0_i32_2 = arith.constant 0 : i32
    return %c0_i32, %c0_i32_0, %c0_i32_1 : i32, i32, i32
  }
  func.func @transform_6(%arg0: i32) -> i32 {
    %c0_i32 = arith.constant 0 : i32
    %c0_i32_0 = arith.constant 0 : i32
    return %c0_i32 : i32
  }
  func.func @transform_7(%arg0: i32) -> (i32, i32) {
    %c0_i32 = arith.constant 0 : i32
    %c0_i32_0 = arith.constant 0 : i32
    %c0_i32_1 = arith.constant 0 : i32
    return %c0_i32, %c0_i32_0 : i32, i32
  }
}

</mosaic_0001>

<bundles_post_ra>
// kernel: discriminator_forward.1
= control target key start
LH: loop header
LB: loop body
LE: loop exit
PB: predicated region body
PF: predicated region fallthrough
CT: control target
= control target key end

     0   :  { %vm170_vm0 = vcmask 261120   ;;  %s3047_s1 = inlined_call_operand.vmem [shape: bf16[32,128], index: 1, kind: input, shape index: {}]   ;;  %s3048_s0 = inlined_call_operand.vmem [shape: bf16[288,32], index: 0, kind: input, shape index: {}]   ;;  %s3049_s2 = inlined_call_operand.vmem [shape: bf16[1152,256], index: 2, kind: input, shape index: {}]   ;;  %s3050_s3 = inlined_call_operand.vmem [shape: f32[1,256], index: 3, kind: input, shape index: {}]   ;;  %s3051_s4 = inlined_call_operand.vmem [shape: f32[1,256], index: 4, kind: input, shape index: {}]   ;;  %s3052_s5 = inlined_call_operand.vmem [shape: f32[1,16,256], index: 5, kind: input, shape index: {}]   ;;  %s3053_s6 = inlined_call_operand.<no memory space> [shape: f32[1], index: 6, kind: input, shape index: {}]   ;;  %s3054_s7 = inlined_call_operand.vmem [shape: f32[2,1], index: 7, kind: output, shape index: {}]  }
   0x1   :  { %v2137_v0 = vld [vmem:[%s3047_s1] sm:$0xff]   ;;  %v2138_v1 = vld [vmem:[%s3047_s1 + $0x8] sm:$0xff]   ;;  %v2141_v4 = vld [vmem:[%s3048_s0 + $0x10] sm:$0xff]  }
   0x2   :  { %2064 = vmatprep.subr.bf16.mxu0 %v2137_v0  ;;  %v2139_v2 = vld [vmem:[%s3048_s0] sm:$0xff]   ;;  %v2140_v3 = vld [vmem:[%s3048_s0 + $0x8] sm:$0xff]   ;;  %v2142_v5 = vld [vmem:[%s3048_s0 + $0x18] sm:$0xff]  }
   0x3   :  { %2065 = vmatpush3.bf16.msra.mxu0 %v2137_v0  ;;  %2068 = vmatprep.mubr.msk.bf16.mxu0 %vm170_vm0, %v2139_v2  ;;  %v2143_v6 = vld [vmem:[%s3048_s0 + $0x20] sm:$0xff]   ;;  %v2144_v9 = vld [vmem:[%s3048_s0 + $0x28] sm:$0xff]   ;;  %v2162_v10 = vld [vmem:[%s3049_s2 + $0x14] ss:$8 sps:$4 sm:$0xff]  }
   0x4   :  { %2066 = vmatprep.subr.bf16.mxu0 %v2138_v1  ;;  %v2157_v7 = vld [vmem:[%s3049_s2] ss:$8 sps:$4 sm:$0xff]   ;;  %v2159_v8 = vld [vmem:[%s3049_s2 + $0x4] ss:$8 sps:$4 sm:$0xff]   ;;  %v2145_v11 = vld [vmem:[%s3048_s0 + $0x30] sm:$0xff]  }
   0x5   :  { %v2160_v12 = vld [vmem:[%s3049_s2 + $0x10] ss:$8 sps:$4 sm:$0xff]   ;;  %v2165_v13 = vld [vmem:[%s3049_s2 + $0x24] ss:$8 sps:$4 sm:$0xff]   ;;  %v2163_v14 = vld [vmem:[%s3049_s2 + $0x20] ss:$8 sps:$4 sm:$0xff]  }
   0x6   :  { %v2168_v15 = vld [vmem:[%s3049_s2 + $0x34] ss:$8 sps:$4 sm:$0xff]   ;;  %v2147_v17 = vld [vmem:[%s3048_s0 + $0x40] sm:$0xff]   ;;  %v2166_v18 = vld [vmem:[%s3049_s2 + $0x30] ss:$8 sps:$4 sm:$0xff]  }
   0x7   :  { %2067 = vmatpush3.bf16.msra.mxu0 %v2138_v1  ;;  %v2146_v16 = vld [vmem:[%s3048_s0 + $0x38] sm:$0xff]   ;;  %v2171_v19 = vld [vmem:[%s3049_s2 + $0x44] ss:$8 sps:$4 sm:$0xff]   ;;  %v2186_v21 = vld [vmem:[%s3049_s2 + $0x200] ss:$8 sps:$4 sm:$0xff]  }
   0x8   :  { %1392 = vmatprep.subr.bf16.mxu0 %v2159_v8  ;;  %v2184_v20 = vld [vmem:[%s3049_s2 + $0x204] ss:$8 sps:$4 sm:$0xff]   ;;  %v2190_v22 = vld [vmem:[%s3049_s2 + $0x214] ss:$8 sps:$4 sm:$0xff]   ;;  %v2192_v23 = vld [vmem:[%s3049_s2 + $0x210] ss:$8 sps:$4 sm:$0xff]  }
   0x9   :  { %1498 = vmatprep.subr.bf16.mxu1 %v2184_v20  ;;  %v2148_v24 = vld [vmem:[%s3048_s0 + $0x48] sm:$0xff]   ;;  %v2149_v26 = vld [vmem:[%s3048_s0 + $0x50] sm:$0xff]   ;;  %v2150_v36 = vld [vmem:[%s3048_s0 + $0x58] sm:$0xff]  }
   0xa   :  { %2069 = vmatmul.mubr.msk.bf16.vlgmr.msra.gmra.mrb[0].mxu0 %vm170_vm0, %v2140_v3  ;;  %1499 = vmatpush1.bf16.msra.mxu1 %v2186_v21  ;;  %v2169_v25 = vld [vmem:[%s3049_s2 + $0x40] ss:$8 sps:$4 sm:$0xff]   ;;  %v2174_v27 = vld [vmem:[%s3049_s2 + $0x54] ss:$8 sps:$4 sm:$0xff]   ;;  %v2172_v28 = vld [vmem:[%s3049_s2 + $0x50] ss:$8 sps:$4 sm:$0xff]  }
   0xb   :  { %2072 = vmatprep.mubr.msk.bf16.mxu0 %vm170_vm0, %v2141_v4  ;;  %1393 = vmatpush1.bf16.msra.mxu0 %v2157_v7  ;;  %v2196_v29 = vld [vmem:[%s3049_s2 + $0x224] ss:$8 sps:$4 sm:$0xff]   ;;  %v2198_v31 = vld [vmem:[%s3049_s2 + $0x220] ss:$8 sps:$4 sm:$0xff]   ;;  %v2202_v32 = vld [vmem:[%s3049_s2 + $0x234] ss:$8 sps:$4 sm:$0xff]  }
   0xc   :  { %1394 = vmatprep.subr.bf16.mxu0 %v2162_v10  ;;  %1500 = vmatprep.subr.bf16.mxu1 %v2190_v22  ;;  %v2177_v30 = vld [vmem:[%s3049_s2 + $0x64] ss:$8 sps:$4 sm:$0xff]   ;;  %v2204_v33 = vld [vmem:[%s3049_s2 + $0x230] ss:$8 sps:$4 sm:$0xff]   ;;  %v2175_v34 = vld [vmem:[%s3049_s2 + $0x60] ss:$8 sps:$4 sm:$0xff]  }
   0xd   :  { %v2180_v35 = vld [vmem:[%s3049_s2 + $0x74] ss:$8 sps:$4 sm:$0xff]   ;;  %v2151_v37 = vld [vmem:[%s3048_s0 + $0x60] sm:$0xff]   ;;  %v2178_v38 = vld [vmem:[%s3049_s2 + $0x70] ss:$8 sps:$4 sm:$0xff]  }
   0xe   :  { %1501 = vmatpush1.bf16.msra.mxu1 %v2192_v23  ;;  %v2183_v39 = vld [vmem:[%s3049_s2 + $0x84] ss:$8 sps:$4 sm:$0xff]   ;;  %v2181_v40 = vld [vmem:[%s3049_s2 + $0x80] ss:$8 sps:$4 sm:$0xff]   ;;  %v2189_v41 = vld [vmem:[%s3049_s2 + $0x94] ss:$8 sps:$4 sm:$0xff]  }
   0xf   :  { %1395 = vmatpush1.bf16.msra.mxu0 %v2160_v12  ;;  %1502 = vmatprep.subr.bf16.mxu1 %v2196_v29  ;;  %v2152_v42 = vld [vmem:[%s3048_s0 + $0x68] sm:$0xff]   ;;  %v2153_v43 = vld [vmem:[%s3048_s0 + $0x70] sm:$0xff]   ;;  %v2154_v48 = vld [vmem:[%s3048_s0 + $0x78] sm:$0xff]  }
  0x10   :  { %1396 = vmatprep.subr.bf16.mxu0 %v2165_v13  ;;  %v2187_v44 = vld [vmem:[%s3049_s2 + $0x90] ss:$8 sps:$4 sm:$0xff]   ;;  %v2195_v45 = vld [vmem:[%s3049_s2 + $0xa4] ss:$8 sps:$4 sm:$0xff]   ;;  %v2193_v46 = vld [vmem:[%s3049_s2 + $0xa0] ss:$8 sps:$4 sm:$0xff]  }
  0x11   :  { %v2201_v47 = vld [vmem:[%s3049_s2 + $0xb4] ss:$8 sps:$4 sm:$0xff]   ;;  %v2155_v49 = vld [vmem:[%s3048_s0 + $0x80] sm:$0xff]   ;;  %v2199_v50 = vld [vmem:[%s3049_s2 + $0xb0] ss:$8 sps:$4 sm:$0xff]  }
  0x12   :  { %2073 = vmatmul.mubr.msk.bf16.gmra.mrb[4].mxu0 %vm170_vm0, %v2142_v5  ;;  %1503 = vmatpush1.bf16.msra.mxu1 %v2198_v31  ;;  %v2156_v51 = vld [vmem:[%s3048_s0 + $0x88] sm:$0xff]   ;;  %v2213_v56 = vld [vmem:[%s3049_s2 + $0xd4] ss:$8 sps:$4 sm:$0xff]   ;;  %v2211_v58 = vld [vmem:[%s3049_s2 + $0xd0] ss:$8 sps:$4 sm:$0xff]  }
  0x13   :  { %2076 = vmatprep.mubr.msk.bf16.mxu0 %vm170_vm0, %v2143_v6  ;;  %1397 = vmatpush1.bf16.msra.mxu0 %v2163_v14  ;;  %v2207_v52 = vld [vmem:[%s3049_s2 + $0xc4] ss:$8 sps:$4 sm:$0xff]   ;;  %v2205_v54 = vld [vmem:[%s3049_s2 + $0xc0] ss:$8 sps:$4 sm:$0xff]   ;;  %v2214_v57 = vld [vmem:[%s3049_s2 + $0x254] ss:$8 sps:$4 sm:$0xff]  }
  0x14   :  { %1398 = vmatprep.subr.bf16.mxu0 %v2168_v15  ;;  %1504 = vmatprep.subr.bf16.mxu1 %v2202_v32  ;;  %v2208_v53 = vld [vmem:[%s3049_s2 + $0x244] ss:$8 sps:$4 sm:$0xff]   ;;  %v2210_v55 = vld [vmem:[%s3049_s2 + $0x240] ss:$8 sps:$4 sm:$0xff]   ;;  %v2216_v59 = vld [vmem:[%s3049_s2 + $0x250] ss:$8 sps:$4 sm:$0xff]  }
  0x15   :  { %v2219_v60 = vld [vmem:[%s3049_s2 + $0xe4] ss:$8 sps:$4 sm:$0xff]   ;;  %v2217_v62 = vld [vmem:[%s3049_s2 + $0xe0] ss:$8 sps:$4 sm:$0xff]   ;;  %v2225_v0 = vld [vmem:[%s3049_s2 + $0xf4] ss:$8 sps:$4 sm:$0xff]  }
  0x16   :  { %1505 = vmatpush1.bf16.msra.mxu1 %v2204_v33  ;;  %v2220_v61 = vld [vmem:[%s3049_s2 + $0x264] ss:$8 sps:$4 sm:$0xff]   ;;  %v2222_v63 = vld [vmem:[%s3049_s2 + $0x260] ss:$8 sps:$4 sm:$0xff]   ;;  %v2226_v1 = vld [vmem:[%s3049_s2 + $0x274] ss:$8 sps:$4 sm:$0xff]  }
  0x17   :  { %1399 = vmatpush1.bf16.msra.mxu0 %v2166_v18  ;;  %1506 = vmatprep.subr.bf16.mxu1 %v2208_v53  ;;  %v2223_v2 = vld [vmem:[%s3049_s2 + $0xf0] ss:$8 sps:$4 sm:$0xff]   ;;  %v2231_v4 = vld [vmem:[%s3049_s2 + $0x104] ss:$8 sps:$4 sm:$0xff]   ;;  %v2234_v6 = vld [vmem:[%s3049_s2 + $0x280] ss:$8 sps:$4 sm:$0xff]  }
  0x18   :  { %1400 = vmatprep.subr.bf16.mxu0 %v2171_v19  ;;  %v2228_v3 = vld [vmem:[%s3049_s2 + $0x270] ss:$8 sps:$4 sm:$0xff]   ;;  %v2232_v5 = vld [vmem:[%s3049_s2 + $0x284] ss:$8 sps:$4 sm:$0xff]   ;;  %v2238_v7 = vld [vmem:[%s3049_s2 + $0x294] ss:$8 sps:$4 sm:$0xff]  }
  0x19   :  { %v2240_v8 = vld [vmem:[%s3049_s2 + $0x290] ss:$8 sps:$4 sm:$0xff]   ;;  %v2246_v10 = vld [vmem:[%s3049_s2 + $0x2a0] ss:$8 sps:$4 sm:$0xff]   ;;  %v2256_v13 = vld [vmem:[%s3049_s2 + $0x2c4] ss:$8 sps:$4 sm:$0xff]  }
  0x1a   :  { %2077 = vmatmul.mubr.msk.bf16.gmra.mrb[8].mxu0 %vm170_vm0, %v2144_v9  ;;  %1507 = vmatpush1.bf16.msra.mxu1 %v2210_v55  ;;  %v2244_v9 = vld [vmem:[%s3049_s2 + $0x2a4] ss:$8 sps:$4 sm:$0xff]   ;;  %v2252_v12 = vld [vmem:[%s3049_s2 + $0x2b0] ss:$8 sps:$4 sm:$0xff]   ;;  %v2258_v14 = vld [vmem:[%s3049_s2 + $0x2c0] ss:$8 sps:$4 sm:$0xff]  }
  0x1b   :  { %2080 = vmatprep.mubr.msk.bf16.mxu0 %vm170_vm0, %v2145_v11  ;;  %1401 = vmatpush1.bf16.msra.mxu0 %v2169_v25  ;;  %v2250_v11 = vld [vmem:[%s3049_s2 + $0x2b4] ss:$8 sps:$4 sm:$0xff]   ;;  %v2270_v18 = vld [vmem:[%s3049_s2 + $0x2e0] ss:$8 sps:$4 sm:$0xff]   ;;  %v2276_v20 = vld [vmem:[%s3049_s2 + $0x2f0] ss:$8 sps:$4 sm:$0xff]  }
  0x1c   :  { %1402 = vmatprep.subr.bf16.mxu0 %v2174_v27  ;;  %1508 = vmatprep.subr.bf16.mxu1 %v2214_v57  ;;  %v2262_v15 = vld [vmem:[%s3049_s2 + $0x2d4] ss:$8 sps:$4 sm:$0xff]   ;;  %v2282_v21 = vld [vmem:[%s3049_s2 + $0x304] ss:$8 sps:$4 sm:$0xff]   ;;  %v2235_v57 = vld [vmem:[%s3049_s2 + $0x110] ss:$8 sps:$4 sm:$0xff]  }
  0x1d   :  { %v2274_v19 = vld [vmem:[%s3049_s2 + $0x2f4] ss:$8 sps:$4 sm:$0xff]  }
  0x1e   :  { %1509 = vmatpush1.bf16.msra.mxu1 %v2216_v59 }
  0x1f   :  { %1403 = vmatpush1.bf16.msra.mxu0 %v2172_v28  ;;  %1510 = vmatprep.subr.bf16.mxu1 %v2220_v61  ;;  %v2243_v61 = vld [vmem:[%s3049_s2 + $0x124] ss:$8 sps:$4 sm:$0xff]  }
  0x20   :  { %1404 = vmatprep.subr.bf16.mxu0 %v2177_v30 }
  0x22   :  { %2081 = vmatmul.mubr.msk.bf16.gmra.mrb[12].mxu0 %vm170_vm0, %v2146_v16  ;;  %1511 = vmatpush1.bf16.msra.mxu1 %v2222_v63  ;;  %v2264_v16 = vld [vmem:[%s3049_s2 + $0x2d0] ss:$8 sps:$4 sm:$0xff]  }
  0x23   :  { %2084 = vmatprep.mubr.msk.bf16.mxu0 %vm170_vm0, %v2147_v17  ;;  %1405 = vmatpush1.bf16.msra.mxu0 %v2175_v34  ;;  %v2268_v17 = vld [vmem:[%s3049_s2 + $0x2e4] ss:$8 sps:$4 sm:$0xff]  }
  0x24   :  { %1406 = vmatprep.subr.bf16.mxu0 %v2180_v35  ;;  %1512 = vmatprep.subr.bf16.mxu1 %v2226_v1 }
  0x26   :  { %1513 = vmatpush1.bf16.msra.mxu1 %v2228_v3 }
  0x27   :  { %1407 = vmatpush1.bf16.msra.mxu0 %v2178_v38  ;;  %1514 = vmatprep.subr.bf16.mxu1 %v2232_v5 }
  0x28   :  { %1408 = vmatprep.subr.bf16.mxu0 %v2183_v39 }
  0x2a   :  { %2085 = vmatmul.mubr.msk.bf16.gmra.mrb[16].mxu0 %vm170_vm0, %v2148_v24  ;;  %1515 = vmatpush1.bf16.msra.mxu1 %v2234_v6  ;;  %v2249_v6 = vld [vmem:[%s3049_s2 + $0x134] ss:$8 sps:$4 sm:$0xff]  }
  0x2b   :  { %2088 = vmatprep.mubr.msk.bf16.mxu0 %vm170_vm0, %v2149_v26  ;;  %1409 = vmatpush1.bf16.msra.mxu0 %v2181_v40 }
  0x2c   :  { %1410 = vmatprep.subr.bf16.mxu0 %v2189_v41  ;;  %1516 = vmatprep.subr.bf16.mxu1 %v2238_v7 }
  0x2e   :  { %1517 = vmatpush1.bf16.msra.mxu1 %v2240_v8 }
  0x2f   :  { %1411 = vmatpush1.bf16.msra.mxu0 %v2187_v44  ;;  %1518 = vmatprep.subr.bf16.mxu1 %v2244_v9 }
  0x30   :  { %1412 = vmatprep.subr.bf16.mxu0 %v2195_v45 }
  0x32   :  { %2089 = vmatmul.mubr.msk.bf16.gmra.mrb[20].mxu0 %vm170_vm0, %v2150_v36  ;;  %1519 = vmatpush1.bf16.msra.mxu1 %v2246_v10 }
  0x33   :  { %2092 = vmatprep.mubr.msk.bf16.mxu0 %vm170_vm0, %v2151_v37  ;;  %1413 = vmatpush1.bf16.msra.mxu0 %v2193_v46 }
  0x34   :  { %1414 = vmatprep.subr.bf16.mxu0 %v2201_v47  ;;  %1520 = vmatprep.subr.bf16.mxu1 %v2250_v11  ;;  %v2247_v11 = vld [vmem:[%s3049_s2 + $0x130] ss:$8 sps:$4 sm:$0xff]  }
  0x36   :  { %1521 = vmatpush1.bf16.msra.mxu1 %v2252_v12 }
  0x37   :  { %1415 = vmatpush1.bf16.msra.mxu0 %v2199_v50  ;;  %1522 = vmatprep.subr.bf16.mxu1 %v2256_v13  ;;  %v2229_v50 = vld [vmem:[%s3049_s2 + $0x100] ss:$8 sps:$4 sm:$0xff]  }
  0x38   :  { %1416 = vmatprep.subr.bf16.mxu0 %v2207_v52  ;;  %v2237_v52 = vld [vmem:[%s3049_s2 + $0x114] ss:$8 sps:$4 sm:$0xff]  }
  0x3a   :  { %2093 = vmatmul.mubr.msk.bf16.gmra.mrb[24].mxu0 %vm170_vm0, %v2152_v42  ;;  %1523 = vmatpush1.bf16.msra.mxu1 %v2258_v14 }
  0x3b   :  { %2096 = vmatprep.mubr.msk.bf16.mxu0 %vm170_vm0, %v2153_v43  ;;  %1417 = vmatpush1.bf16.msra.mxu0 %v2205_v54 }
  0x3c   :  { %1418 = vmatprep.subr.bf16.mxu0 %v2213_v56  ;;  %1524 = vmatprep.subr.bf16.mxu1 %v2262_v15  ;;  %v2255_v15 = vld [vmem:[%s3049_s2 + $0x144] ss:$8 sps:$4 sm:$0xff]  }
  0x3e   :  { %1525 = vmatpush1.bf16.msra.mxu1 %v2264_v16 }
  0x3f   :  { %1419 = vmatpush1.bf16.msra.mxu0 %v2211_v58  ;;  %1526 = vmatprep.subr.bf16.mxu1 %v2268_v17 }
  0x40   :  { %1420 = vmatprep.subr.bf16.mxu0 %v2219_v60 }
  0x42   :  { %2097 = vmatmul.mubr.msk.bf16.gmra.mrb[28].mxu0 %vm170_vm0, %v2154_v48  ;;  %1527 = vmatpush1.bf16.msra.mxu1 %v2270_v18 }
  0x43   :  { %2100 = vmatprep.mubr.msk.bf16.mxu0 %vm170_vm0, %v2155_v49  ;;  %1421 = vmatpush1.bf16.msra.mxu0 %v2217_v62 }
  0x44   :  { %1422 = vmatprep.subr.bf16.mxu0 %v2225_v0  ;;  %1528 = vmatprep.subr.bf16.mxu1 %v2274_v19 }
  0x46   :  { %1529 = vmatpush1.bf16.msra.mxu1 %v2276_v20 }
  0x47   :  { %1423 = vmatpush1.bf16.msra.mxu0 %v2223_v2  ;;  %1551 = vmatprep.subr.bf16.mxu1 %v2282_v21  ;;  %v2253_v21 = vld [vmem:[%s3049_s2 + $0x140] ss:$8 sps:$4 sm:$0xff]  }
  0x48   :  { %1445 = vmatprep.subr.bf16.mxu0 %v2231_v4  ;;  %v2241_v4 = vld [vmem:[%s3049_s2 + $0x120] ss:$8 sps:$4 sm:$0xff]  }
  0x4a   :  { %2101 = vmatmul.mubr.msk.bf16.gmra.mrb[32].mxu0 %vm170_vm0, %v2156_v51 }
  0xdd   :  { %v2070_v22 = vpop.f32.mrb[0].mxu0 }
  0xde   :  { %v440_v23 = vmul.f32 0.2, %v2070_v22  ;;  %v259_v24 = vpop.f32.mrb[1].mxu0  ;;  %vm404_vm1 = vcmp.ge.f32.partialorder %v2070_v22, 0.0 }
  0xdf   :  { %v438_v25 = vmul.f32 0.2, %v259_v24  ;;  %v2071_v26 = vpop.f32.mrb[2].mxu0  ;;  %vm402_vm2 = vcmp.ge.f32.partialorder %v259_v24, 0.0 }
  0xe0   :  { %vm405_vm3 = vcmp.ge.f32.partialorder %v2071_v26, 0.0  ;;  %v441_v27 = vmul.f32 0.2, %v2071_v26  ;;  %v262_v28 = vpop.f32.mrb[3].mxu0  ;;  %v476_v30 = vsel %vm404_vm1, %v2070_v22, %v440_v23 }
  0xe1   :  { %vm403_vm4 = vcmp.ge.f32.partialorder %v262_v28, 0.0  ;;  %v439_v29 = vmul.f32 0.2, %v262_v28  ;;  %v474_v32 = vsel %vm402_vm2, %v259_v24, %v438_v25  ;;  %v2261_v24 = vld [vmem:[%s3049_s2 + $0x154] ss:$8 sps:$4 sm:$0xff]  }
  0xe2   :  { %v477_v31 = vsel %vm405_vm3, %v2071_v26, %v441_v27 }
  0xe3   :  { %v475_v33 = vsel %vm403_vm4, %v262_v28, %v439_v29  ;;  %v519_v34 = vpack.c.bf16 %v477_v31, %v476_v30  ;;  %v2259_v29 = vld [vmem:[%s3049_s2 + $0x150] ss:$8 sps:$4 sm:$0xff]  }
  0xe4   :  { %v510_v35 = vpack.c.bf16 %v475_v33, %v474_v32  ;;  %v2267_v33 = vld [vmem:[%s3049_s2 + $0x164] ss:$8 sps:$4 sm:$0xff]  }
  0xe5   :  { %v2074_v36 = vpop.f32.mrb[4].mxu0 }
  0xe6   :  { %v444_v37 = vmul.f32 0.2, %v2074_v36  ;;  %v275_v38 = vpop.f32.mrb[5].mxu0  ;;  %vm408_vm5 = vcmp.ge.f32.partialorder %v2074_v36, 0.0 }
  0xe7   :  { %v442_v39 = vmul.f32 0.2, %v275_v38  ;;  %v2075_v40 = vpop.f32.mrb[6].mxu0  ;;  %vm406_vm6 = vcmp.ge.f32.partialorder %v275_v38, 0.0 }
  0xe8   :  { %vm409_vm7 = vcmp.ge.f32.partialorder %v2075_v40, 0.0  ;;  %v445_v41 = vmul.f32 0.2, %v2075_v40  ;;  %v278_v42 = vpop.f32.mrb[7].mxu0  ;;  %v480_v44 = vsel %vm408_vm5, %v2074_v36, %v444_v37 }
  0xe9   :  { %vm407_vm8 = vcmp.ge.f32.partialorder %v278_v42, 0.0  ;;  %v443_v43 = vmul.f32 0.2, %v278_v42  ;;  %v478_v46 = vsel %vm406_vm6, %v275_v38, %v442_v39  ;;  %v2265_v39 = vld [vmem:[%s3049_s2 + $0x160] ss:$8 sps:$4 sm:$0xff]  }
  0xea   :  { %v481_v45 = vsel %vm409_vm7, %v2075_v40, %v445_v41 }
  0xeb   :  { %v479_v47 = vsel %vm407_vm8, %v278_v42, %v443_v43  ;;  %v520_v48 = vpack.c.bf16 %v481_v45, %v480_v44  ;;  %v2273_v42 = vld [vmem:[%s3049_s2 + $0x174] ss:$8 sps:$4 sm:$0xff]  }
  0xec   :  { %v511_v49 = vpack.c.bf16 %v479_v47, %v478_v46  ;;  %v2271_v47 = vld [vmem:[%s3049_s2 + $0x170] ss:$8 sps:$4 sm:$0xff]  }
  0xed   :  { %v2078_v51 = vpop.f32.mrb[8].mxu0 }
  0xee   :  { %v448_v53 = vmul.f32 0.2, %v2078_v51  ;;  %v291_v54 = vpop.f32.mrb[9].mxu0  ;;  %1424 = vmatprep.mubr.bf16.mxu0 %v511_v49  ;;  %vm412_vm9 = vcmp.ge.f32.partialorder %v2078_v51, 0.0 }
  0xef   :  { %v446_v55 = vmul.f32 0.2, %v291_v54  ;;  %v2079_v56 = vpop.f32.mrb[10].mxu0  ;;  %1425 = vmatmul.mubr.bf16.vlgmr.msra.gmra.mrb[36].mxu0 %v510_v35  ;;  %vm410_vm10 = vcmp.ge.f32.partialorder %v291_v54, 0.0 }
  0xf0   :  { %vm413_vm11 = vcmp.ge.f32.partialorder %v2079_v56, 0.0  ;;  %v449_v58 = vmul.f32 0.2, %v2079_v56  ;;  %1446 = vmatpush1.bf16.msra.mxu0 %v2229_v50  ;;  %v294_v59 = vpop.f32.mrb[11].mxu0  ;;  %1434 = vmatprep.mubr.bf16.mxu0 %v520_v48  ;;  %v2710_v62 = vsel %vm412_vm9, %v2078_v51, %v448_v53  ;;  %v2279_v51 = vld [vmem:[%s3049_s2 + $0x184] ss:$8 sps:$4 sm:$0xff]  }
  0xf1   :  { %vm411_vm12 = vcmp.ge.f32.partialorder %v294_v59, 0.0  ;;  %v447_v60 = vmul.f32 0.2, %v294_v59  ;;  %1447 = vmatprep.subr.bf16.mxu0 %v2237_v52  ;;  %v2714_v0 = vsel %vm410_vm10, %v291_v54, %v446_v55 }
  0xf2   :  { %v2712_v63 = vsel %vm413_vm11, %v2079_v56, %v449_v58 }
  0xf3   :  { %v2716_v1 = vsel %vm411_vm12, %v294_v59, %v447_v60  ;;  %v521_v2 = vpack.c.bf16 %v2712_v63, %v2710_v62  ;;  %v2280_v59 = vld [vmem:[%s3049_s2 + $0x300] ss:$8 sps:$4 sm:$0xff]   ;;  %v2285_v60 = vld [vmem:[%s3049_s2 + $0x194] ss:$8 sps:$4 sm:$0xff]   ;;  %v2340_v63 = vld [vmem:[%s3049_s2 + $0x3d0] ss:$8 sps:$4 sm:$0xff]  }
  0xf4   :  { %v512_v3 = vpack.c.bf16 %v2716_v1, %v2714_v0  ;;  %1448 = vmatpush1.bf16.msra.mxu0 %v2235_v57  ;;  %v2277_v57 = vld [vmem:[%s3049_s2 + $0x180] ss:$8 sps:$4 sm:$0xff]   ;;  %v2336_v1 = vld [vmem:[%s3049_s2 + $0x3b4] ss:$8 sps:$4 sm:$0xff]  }
  0xf5   :  { %v2082_v5 = vpop.f32.mrb[12].mxu0  ;;  %1449 = vmatprep.subr.bf16.mxu0 %v2243_v61  ;;  %v2331_v0 = vld [vmem:[%s3049_s2 + $0x3a0] ss:$8 sps:$4 sm:$0xff]   ;;  %v2342_v62 = vld [vmem:[%s3049_s2 + $0x3d4] ss:$8 sps:$4 sm:$0xff]  }
  0xf6   :  { %v452_v7 = vmul.f32 0.2, %v2082_v5  ;;  %v307_v8 = vpop.f32.mrb[13].mxu0  ;;  %vm416_vm13 = vcmp.ge.f32.partialorder %v2082_v5, 0.0 }
  0xf7   :  { %v450_v9 = vmul.f32 0.2, %v307_v8  ;;  %v2083_v10 = vpop.f32.mrb[14].mxu0  ;;  %1435 = vmatmul.mubr.bf16.gmra.mrb[40].mxu0 %v519_v34  ;;  %vm414_vm14 = vcmp.ge.f32.partialorder %v307_v8, 0.0 }
  0xf8   :  { %vm417_vm15 = vcmp.ge.f32.partialorder %v2083_v10, 0.0  ;;  %v453_v12 = vmul.f32 0.2, %v2083_v10  ;;  %1450 = vmatpush1.bf16.msra.mxu0 %v2241_v4  ;;  %v310_v13 = vpop.f32.mrb[15].mxu0  ;;  %v2734_v16 = vsel %vm416_vm13, %v2082_v5, %v452_v7  ;;  %v2283_v4 = vld [vmem:[%s3049_s2 + $0x190] ss:$8 sps:$4 sm:$0xff]  }
  0xf9   :  { %vm415_vm0 = vcmp.ge.f32.partialorder %v310_v13, 0.0  ;;  %v451_v14 = vmul.f32 0.2, %v310_v13  ;;  %1451 = vmatprep.subr.bf16.mxu0 %v2249_v6  ;;  %v486_v18 = vsel %vm414_vm14, %v307_v8, %v450_v9  ;;  %v2288_v5 = vld [vmem:[%s3049_s2 + $0x314] ss:$8 sps:$4 sm:$0xff]  }
  0xfa   :  { %v2736_v17 = vsel %vm417_vm15, %v2083_v10, %v453_v12  ;;  %v2286_v8 = vld [vmem:[%s3049_s2 + $0x310] ss:$8 sps:$4 sm:$0xff]  }
  0xfb   :  { %v487_v19 = vsel %vm415_vm0, %v310_v13, %v451_v14  ;;  %v522_v20 = vpack.c.bf16 %v2736_v17, %v2734_v16  ;;  %v2339_v16 = vld [vmem:[%s3049_s2 + $0x3c4] ss:$8 sps:$4 sm:$0xff]   ;;  %v2337_v17 = vld [vmem:[%s3049_s2 + $0x3c0] ss:$8 sps:$4 sm:$0xff]  }
  0xfc   :  { %1452 = vmatpush1.bf16.msra.mxu0 %v2247_v11  ;;  %v513_v22 = vpack.c.bf16 %v487_v19, %v486_v18  ;;  %v2291_v11 = vld [vmem:[%s3049_s2 + $0x1a4] ss:$8 sps:$4 sm:$0xff]  }
  0xfd   :  { %v2086_v23 = vpop.f32.mrb[16].mxu0  ;;  %1453 = vmatprep.subr.bf16.mxu0 %v2255_v15  ;;  %v2294_v15 = vld [vmem:[%s3049_s2 + $0x324] ss:$8 sps:$4 sm:$0xff]  }
  0xfe   :  { %v456_v25 = vmul.f32 0.2, %v2086_v23  ;;  %v323_v26 = vpop.f32.mrb[17].mxu0  ;;  %1477 = vmatprep.mubr.bf16.mxu0 %v513_v22  ;;  %vm420_vm1 = vcmp.ge.f32.partialorder %v2086_v23, 0.0 }
  0xff   :  { %v454_v27 = vmul.f32 0.2, %v323_v26  ;;  %v2087_v28 = vpop.f32.mrb[18].mxu0  ;;  %vm418_vm2 = vcmp.ge.f32.partialorder %v323_v26, 0.0 }
 0x100   :  { %vm421_vm3 = vcmp.ge.f32.partialorder %v2087_v28, 0.0  ;;  %v457_v30 = vmul.f32 0.2, %v2087_v28  ;;  %1454 = vmatpush1.bf16.msra.mxu0 %v2253_v21  ;;  %v326_v31 = vpop.f32.mrb[19].mxu0  ;;  %v2752_v34 = vsel %vm420_vm1, %v2086_v23, %v456_v25  ;;  %v2292_v25 = vld [vmem:[%s3049_s2 + $0x320] ss:$8 sps:$4 sm:$0xff]  }
 0x101   :  { %vm419_vm4 = vcmp.ge.f32.partialorder %v326_v31, 0.0  ;;  %v455_v32 = vmul.f32 0.2, %v326_v31  ;;  %1455 = vmatprep.subr.bf16.mxu0 %v2261_v24  ;;  %v490_v36 = vsel %vm418_vm2, %v323_v26, %v454_v27  ;;  %v2289_v24 = vld [vmem:[%s3049_s2 + $0x1a0] ss:$8 sps:$4 sm:$0xff]  }
 0x102   :  { %v2754_v35 = vsel %vm421_vm3, %v2087_v28, %v457_v30  ;;  %v2297_v27 = vld [vmem:[%s3049_s2 + $0x1b4] ss:$8 sps:$4 sm:$0xff]   ;;  %v2295_v30 = vld [vmem:[%s3049_s2 + $0x1b0] ss:$8 sps:$4 sm:$0xff]  }
 0x103   :  { %v491_v37 = vsel %vm419_vm4, %v326_v31, %v455_v32  ;;  %v523_v38 = vpack.c.bf16 %v2754_v35, %v2752_v34  ;;  %v2300_v28 = vld [vmem:[%s3049_s2 + $0x334] ss:$8 sps:$4 sm:$0xff]   ;;  %v2306_v34 = vld [vmem:[%s3049_s2 + $0x344] ss:$8 sps:$4 sm:$0xff]  }
 0x104   :  { %1456 = vmatpush1.bf16.msra.mxu0 %v2259_v29  ;;  %v514_v40 = vpack.c.bf16 %v491_v37, %v490_v36 }
 0x105   :  { %v2090_v41 = vpop.f32.mrb[20].mxu0  ;;  %1457 = vmatprep.subr.bf16.mxu0 %v2267_v33  ;;  %v2298_v33 = vld [vmem:[%s3049_s2 + $0x330] ss:$8 sps:$4 sm:$0xff]  }
 0x106   :  { %v460_v43 = vmul.f32 0.2, %v2090_v41  ;;  %v339_v44 = vpop.f32.mrb[21].mxu0  ;;  %vm424_vm5 = vcmp.ge.f32.partialorder %v2090_v41, 0.0 }
 0x107   :  { %v458_v45 = vmul.f32 0.2, %v339_v44  ;;  %v2091_v46 = vpop.f32.mrb[22].mxu0  ;;  %vm422_vm7 = vcmp.ge.f32.partialorder %v339_v44, 0.0 }
 0x108   :  { %vm425_vm6 = vcmp.ge.f32.partialorder %v2091_v46, 0.0  ;;  %v461_v48 = vmul.f32 0.2, %v2091_v46  ;;  %1458 = vmatpush1.bf16.msra.mxu0 %v2265_v39  ;;  %v342_v49 = vpop.f32.mrb[23].mxu0  ;;  %v496_v52 = vsel %vm424_vm5, %v2090_v41, %v460_v43  ;;  %v2303_v39 = vld [vmem:[%s3049_s2 + $0x1c4] ss:$8 sps:$4 sm:$0xff]  }
 0x109   :  { %v459_v50 = vmul.f32 0.2, %v342_v49  ;;  %1459 = vmatprep.subr.bf16.mxu0 %v2273_v42  ;;  %vm423_vm8 = vcmp.ge.f32.partialorder %v342_v49, 0.0  ;;  %v494_v54 = vsel %vm422_vm7, %v339_v44, %v458_v45 }
 0x10a   :  { %v497_v53 = vsel %vm425_vm6, %v2091_v46, %v461_v48  ;;  %v2301_v46 = vld [vmem:[%s3049_s2 + $0x1c0] ss:$8 sps:$4 sm:$0xff]  }
 0x10b   :  { %v495_v55 = vsel %vm423_vm8, %v342_v49, %v459_v50  ;;  %v524_v56 = vpack.c.bf16 %v497_v53, %v496_v52  ;;  %v2309_v49 = vld [vmem:[%s3049_s2 + $0x1d4] ss:$8 sps:$4 sm:$0xff]   ;;  %v2307_v52 = vld [vmem:[%s3049_s2 + $0x1d0] ss:$8 sps:$4 sm:$0xff]  }
 0x10c   :  { %1460 = vmatpush1.bf16.msra.mxu0 %v2271_v47  ;;  %v515_v58 = vpack.c.bf16 %v495_v55, %v494_v54  ;;  %v2304_v47 = vld [vmem:[%s3049_s2 + $0x340] ss:$8 sps:$4 sm:$0xff]   ;;  %v2312_v50 = vld [vmem:[%s3049_s2 + $0x354] ss:$8 sps:$4 sm:$0xff]   ;;  %v2310_v55 = vld [vmem:[%s3049_s2 + $0x350] ss:$8 sps:$4 sm:$0xff]  }
 0x10d   :  { %1461 = vmatprep.subr.bf16.mxu0 %v2279_v51  ;;  %v2094_v61 = vpop.f32.mrb[24].mxu0 }
 0x10e   :  { %1530 = vmatprep.mubr.bf16.mxu1 %v515_v58  ;;  %vm428_vm9 = vcmp.ge.f32.partialorder %v2094_v61, 0.0  ;;  %v464_v6 = vmul.f32 0.2, %v2094_v61  ;;  %v355_v7 = vpop.f32.mrb[25].mxu0  ;;  %v2315_v58 = vld [vmem:[%s3049_s2 + $0x1e4] ss:$8 sps:$4 sm:$0xff]  }
 0x10f   :  { %1531 = vmatmul.mubr.bf16.vlgmr.msra.gmra.mrb[0].mxu1 %v514_v40  ;;  %vm426_vm10 = vcmp.ge.f32.partialorder %v355_v7, 0.0  ;;  %v462_v9 = vmul.f32 0.2, %v355_v7  ;;  %v2095_v10 = vpop.f32.mrb[26].mxu0 }
 0x110   :  { %1462 = vmatpush1.bf16.msra.mxu0 %v2277_v57  ;;  %1552 = vmatpush1.bf16.msra.mxu1 %v2280_v59  ;;  %v2791_v12 = vsel %vm428_vm9, %v2094_v61, %v464_v6  ;;  %vm429_vm11 = vcmp.ge.f32.partialorder %v2095_v10, 0.0  ;;  %v465_v13 = vmul.f32 0.2, %v2095_v10  ;;  %v358_v14 = vpop.f32.mrb[27].mxu0 }
 0x111   :  { %1540 = vmatprep.mubr.bf16.mxu1 %v524_v56  ;;  %1463 = vmatprep.subr.bf16.mxu0 %v2285_v60  ;;  %v2796_v18 = vsel %vm426_vm10, %v355_v7, %v462_v9  ;;  %vm427_vm12 = vcmp.ge.f32.partialorder %v358_v14, 0.0  ;;  %v463_v19 = vmul.f32 0.2, %v358_v14 }
 0x112   :  { %1553 = vmatprep.subr.bf16.mxu1 %v2288_v5  ;;  %v2798_v21 = vsel %vm429_vm11, %v2095_v10, %v465_v13  ;;  %v2313_v10 = vld [vmem:[%s3049_s2 + $0x1e0] ss:$8 sps:$4 sm:$0xff]  }
 0x113   :  { %v2800_v22 = vsel %vm427_vm12, %v358_v14, %v463_v19  ;;  %v525_v23 = vpack.c.bf16 %v2798_v21, %v2791_v12  ;;  %v2321_v14 = vld [vmem:[%s3049_s2 + $0x1f4] ss:$8 sps:$4 sm:$0xff]   ;;  %v2319_v19 = vld [vmem:[%s3049_s2 + $0x1f0] ss:$8 sps:$4 sm:$0xff]  }
 0x114   :  { %1464 = vmatpush1.bf16.msra.mxu0 %v2283_v4  ;;  %1554 = vmatpush1.bf16.msra.mxu1 %v2286_v8  ;;  %v516_v26 = vpack.c.bf16 %v2800_v22, %v2796_v18  ;;  %v2318_v4 = vld [vmem:[%s3049_s2 + $0x364] ss:$8 sps:$4 sm:$0xff]   ;;  %v2355_v18 = vld [vmem:[%s3049_s2 + $0x420] ss:$8 sps:$4 sm:$0xff]   ;;  %v2360_v22 = vld [vmem:[%s3049_s2 + $0x434] ss:$8 sps:$4 sm:$0xff]  }
 0x115   :  { %1465 = vmatprep.subr.bf16.mxu0 %v2291_v11  ;;  %1555 = vmatprep.subr.bf16.mxu1 %v2294_v15  ;;  %v2098_v29 = vpop.f32.mrb[28].mxu0  ;;  %v2316_v11 = vld [vmem:[%s3049_s2 + $0x360] ss:$8 sps:$4 sm:$0xff]   ;;  %v2324_v15 = vld [vmem:[%s3049_s2 + $0x374] ss:$8 sps:$4 sm:$0xff]  }
 0x116   :  { %vm432_vm13 = vcmp.ge.f32.partialorder %v2098_v29, 0.0  ;;  %v468_v31 = vmul.f32 0.2, %v2098_v29  ;;  %v371_v32 = vpop.f32.mrb[29].mxu0  ;;  %v2366_v12 = vld [vmem:[%s3049_s2 + $0x454] ss:$8 sps:$4 sm:$0xff]  }
 0x117   :  { %1541 = vmatmul.mubr.bf16.gmra.mrb[4].mxu1 %v523_v38  ;;  %vm430_vm14 = vcmp.ge.f32.partialorder %v371_v32, 0.0  ;;  %v466_v36 = vmul.f32 0.2, %v371_v32  ;;  %v2099_v37 = vpop.f32.mrb[30].mxu0  ;;  %v2364_v21 = vld [vmem:[%s3049_s2 + $0x450] ss:$8 sps:$4 sm:$0xff]  }
 0x118   :  { %1466 = vmatpush1.bf16.msra.mxu0 %v2289_v24  ;;  %1556 = vmatpush1.bf16.msra.mxu1 %v2292_v25  ;;  %v2830_v40 = vsel %vm432_vm13, %v2098_v29, %v468_v31  ;;  %vm433_vm15 = vcmp.ge.f32.partialorder %v2099_v37, 0.0  ;;  %v469_v41 = vmul.f32 0.2, %v2099_v37  ;;  %v374_v42 = vpop.f32.mrb[31].mxu0  ;;  %v2322_v24 = vld [vmem:[%s3049_s2 + $0x370] ss:$8 sps:$4 sm:$0xff]  }
 0x119   :  { %1467 = vmatprep.subr.bf16.mxu0 %v2297_v27  ;;  %1557 = vmatprep.subr.bf16.mxu1 %v2300_v28  ;;  %v502_v35 = vsel %vm430_vm14, %v371_v32, %v466_v36  ;;  %vm431_vm0 = vcmp.ge.f32.partialorder %v374_v42, 0.0  ;;  %v467_v38 = vmul.f32 0.2, %v374_v42  ;;  %v2327_v25 = vld [vmem:[%s3049_s2 + $0x384] ss:$8 sps:$4 sm:$0xff]   ;;  %vm1828_vm13 = vcmask 130112  }
 0x11a   :  { %v2835_v43 = vsel %vm433_vm15, %v2099_v37, %v469_v41  ;;  %v2325_v27 = vld [vmem:[%s3049_s2 + $0x380] ss:$8 sps:$4 sm:$0xff]   ;;  %v2330_v28 = vld [vmem:[%s3049_s2 + $0x394] ss:$8 sps:$4 sm:$0xff]   ;;  %v2328_v29 = vld [vmem:[%s3049_s2 + $0x390] ss:$8 sps:$4 sm:$0xff]  }
 0x11b   :  { %v503_v44 = vsel %vm431_vm0, %v374_v42, %v467_v38  ;;  %v526_v45 = vpack.c.bf16 %v2835_v43, %v2830_v40  ;;  %v2348_v31 = vld [vmem:[%s3049_s2 + $0x3f4] ss:$8 sps:$4 sm:$0xff]   ;;  %v2346_v32 = vld [vmem:[%s3049_s2 + $0x3f0] ss:$8 sps:$4 sm:$0xff]   ;;  %v2349_v36 = vld [vmem:[%s3049_s2 + $0x400] ss:$8 sps:$4 sm:$0xff]  }
 0x11c   :  { %1468 = vmatpush1.bf16.msra.mxu0 %v2295_v30  ;;  %1558 = vmatpush1.bf16.msra.mxu1 %v2298_v33  ;;  %v517_v48 = vpack.c.bf16 %v503_v44, %v502_v35  ;;  %v2333_v30 = vld [vmem:[%s3049_s2 + $0x3a4] ss:$8 sps:$4 sm:$0xff]   ;;  %v2354_v37 = vld [vmem:[%s3049_s2 + $0x414] ss:$8 sps:$4 sm:$0xff]   ;;  %v2381_v40 = vmov 0   ;;  %vm1839_vm14 = vcmask 1041409  }
 0x11d   :  { %1469 = vmatprep.subr.bf16.mxu0 %v2303_v39  ;;  %1559 = vmatprep.subr.bf16.mxu1 %v2306_v34  ;;  %v2102_v51 = vpop.f32.mrb[32].mxu0  ;;  %v2351_v33 = vld [vmem:[%s3049_s2 + $0x404] ss:$8 sps:$4 sm:$0xff]   ;;  %v2352_v39 = vld [vmem:[%s3049_s2 + $0x410] ss:$8 sps:$4 sm:$0xff]   ;;  %vm1842_vm15 = vcmask 123904  }
 0x11e   :  { %1583 = vmatprep.mubr.bf16.mxu1 %v517_v48  ;;  %vm436_vm1 = vcmp.ge.f32.partialorder %v2102_v51, 0.0  ;;  %v472_v53 = vmul.f32 0.2, %v2102_v51  ;;  %v387_v54 = vpop.f32.mrb[33].mxu0  ;;  %v2357_v41 = vld [vmem:[%s3049_s2 + $0x424] ss:$8 sps:$4 sm:$0xff]  }
 0x11f   :  { %vm434_vm2 = vcmp.ge.f32.partialorder %v387_v54, 0.0  ;;  %v470_v56 = vmul.f32 0.2, %v387_v54  ;;  %v2103_v57 = vpop.f32.mrb[34].mxu0  ;;  %v2363_v42 = vld [vmem:[%s3049_s2 + $0x444] ss:$8 sps:$4 sm:$0xff]  }
 0x120   :  { %1470 = vmatpush1.bf16.msra.mxu0 %v2301_v46  ;;  %1560 = vmatpush1.bf16.msra.mxu1 %v2304_v47  ;;  %v2860_v59 = vsel %vm436_vm1, %v2102_v51, %v472_v53  ;;  %vm437_vm3 = vcmp.ge.f32.partialorder %v2103_v57, 0.0  ;;  %v473_v60 = vmul.f32 0.2, %v2103_v57  ;;  %v390_v61 = vpop.f32.mrb[35].mxu0  ;;  %v2361_v34 = vld [vmem:[%s3049_s2 + $0x440] ss:$8 sps:$4 sm:$0xff]  }
 0x121   :  { %1471 = vmatprep.subr.bf16.mxu0 %v2309_v49  ;;  %1561 = vmatprep.subr.bf16.mxu1 %v2312_v50  ;;  %v2865_v5 = vsel %vm434_vm2, %v387_v54, %v470_v56  ;;  %vm435_vm4 = vcmp.ge.f32.partialorder %v390_v61, 0.0  ;;  %v471_v6 = vmul.f32 0.2, %v390_v61  ;;  %v2367_v35 = vld [vmem:[%s3049_s2 + $0x460] ss:$8 sps:$4 sm:$0xff]   ;;  %vm1855_vm0 = vcmask 1024  }
 0x122   :  { %v2867_v7 = vsel %vm437_vm3, %v2103_v57, %v473_v60  ;;  %v2372_v38 = vld [vmem:[%s3049_s2 + $0x474] ss:$8 sps:$4 sm:$0xff]   ;;  %v2370_v43 = vld [vmem:[%s3049_s2 + $0x470] ss:$8 sps:$4 sm:$0xff]  }
 0x123   :  { %v2869_v8 = vsel %vm435_vm4, %v390_v61, %v471_v6  ;;  %v527_v9 = vpack.c.bf16 %v2867_v7, %v2860_v59 }
 0x124   :  { %1472 = vmatpush1.bf16.msra.mxu0 %v2307_v52  ;;  %1562 = vmatpush1.bf16.msra.mxu1 %v2310_v55  ;;  %v518_v13 = vpack.c.bf16 %v2869_v8, %v2865_v5 }
 0x125   :  { %1473 = vmatprep.subr.bf16.mxu0 %v2315_v58  ;;  %1563 = vmatprep.subr.bf16.mxu1 %v2318_v4 }
 0x128   :  { %1474 = vmatpush1.bf16.msra.mxu0 %v2313_v10  ;;  %1564 = vmatpush1.bf16.msra.mxu1 %v2316_v11 }
 0x129   :  { %1475 = vmatprep.subr.bf16.mxu0 %v2321_v14  ;;  %1565 = vmatprep.subr.bf16.mxu1 %v2324_v15 }
 0x12c   :  { %1476 = vmatpush1.bf16.msra.mxu0 %v2319_v19  ;;  %1566 = vmatpush1.bf16.msra.mxu1 %v2322_v24 }
 0x12d   :  { %1567 = vmatprep.subr.bf16.mxu1 %v2327_v25 }
 0x12f   :  { %1478 = vmatmul.mubr.bf16.vlgmr.msra.gmra.mrb[36].mxu0 %v512_v3  ;;  %v2334_v3 = vld [vmem:[%s3049_s2 + $0x3b0] ss:$8 sps:$4 sm:$0xff]  }
 0x130   :  { %1487 = vmatprep.mubr.bf16.mxu0 %v522_v20  ;;  %1568 = vmatpush1.bf16.msra.mxu1 %v2325_v27  ;;  %v2343_v20 = vld [vmem:[%s3049_s2 + $0x3e0] ss:$8 sps:$4 sm:$0xff]  }
 0x131   :  { %1569 = vmatprep.subr.bf16.mxu1 %v2330_v28 }
 0x134   :  { %1570 = vmatpush1.bf16.msra.mxu1 %v2328_v29 }
 0x135   :  { %1571 = vmatprep.subr.bf16.mxu1 %v2333_v30 }
 0x137   :  { %1488 = vmatmul.mubr.bf16.gmra.mrb[40].mxu0 %v521_v2  ;;  %v2345_v2 = vld [vmem:[%s3049_s2 + $0x3e4] ss:$8 sps:$4 sm:$0xff]  }
 0x138   :  { %1572 = vmatpush1.bf16.msra.mxu1 %v2331_v0 }
 0x139   :  { %1573 = vmatprep.subr.bf16.mxu1 %v2336_v1 }
 0x13c   :  { %1574 = vmatpush1.bf16.msra.mxu1 %v2334_v3 }
 0x13d   :  { %1575 = vmatprep.subr.bf16.mxu1 %v2339_v16 }
 0x140   :  { %1576 = vmatpush1.bf16.msra.mxu1 %v2337_v17 }
 0x141   :  { %1577 = vmatprep.subr.bf16.mxu1 %v2342_v62 }
 0x144   :  { %1578 = vmatpush1.bf16.msra.mxu1 %v2340_v63 }
 0x145   :  { %1579 = vmatprep.subr.bf16.mxu1 %v2345_v2 }
 0x148   :  { %1580 = vmatpush1.bf16.msra.mxu1 %v2343_v20 }
 0x149   :  { %1581 = vmatprep.subr.bf16.mxu1 %v2348_v31 }
 0x14c   :  { %1582 = vmatpush1.bf16.msra.mxu1 %v2346_v32 }
 0x14d   :  { %1604 = vmatprep.subr.bf16.mxu1 %v2351_v33 }
 0x14f   :  { %1584 = vmatmul.mubr.bf16.vlgmr.msra.gmra.mrb[0].mxu1 %v516_v26  ;;  %v2358_v26 = vld [vmem:[%s3049_s2 + $0x430] ss:$8 sps:$4 sm:$0xff]  }
 0x150   :  { %1593 = vmatprep.mubr.bf16.mxu1 %v526_v45  ;;  %1605 = vmatpush1.bf16.msra.mxu1 %v2349_v36 }
 0x151   :  { %1606 = vmatprep.subr.bf16.mxu1 %v2354_v37 }
 0x154   :  { %1607 = vmatpush1.bf16.msra.mxu1 %v2352_v39 }
 0x155   :  { %1608 = vmatprep.subr.bf16.mxu1 %v2357_v41 }
 0x157   :  { %1594 = vmatmul.mubr.bf16.gmra.mrb[4].mxu1 %v525_v23  ;;  %v2369_v23 = vld [vmem:[%s3049_s2 + $0x464] ss:$8 sps:$4 sm:$0xff]  }
 0x158   :  { %1609 = vmatpush1.bf16.msra.mxu1 %v2355_v18  ;;  %1636 = vmatprep.mubr.bf16.mxu1 %v2381_v40 }
 0x159   :  { %1610 = vmatprep.subr.bf16.mxu1 %v2360_v22 }
 0x15c   :  { %1611 = vmatpush1.bf16.msra.mxu1 %v2358_v26 }
 0x15d   :  { %1612 = vmatprep.subr.bf16.mxu1 %v2363_v42 }
 0x160   :  { %1613 = vmatpush1.bf16.msra.mxu1 %v2361_v34 }
 0x161   :  { %1614 = vmatprep.subr.bf16.mxu1 %v2366_v12 }
 0x164   :  { %1615 = vmatpush1.bf16.msra.mxu1 %v2364_v21 }
 0x165   :  { %1616 = vmatprep.subr.bf16.mxu1 %v2369_v23 }
 0x168   :  { %1617 = vmatpush1.bf16.msra.mxu1 %v2367_v35 }
 0x169   :  { %1618 = vmatprep.subr.bf16.mxu1 %v2372_v38 }
 0x16c   :  { %1619 = vmatpush1.bf16.msra.mxu1 %v2370_v43 }
 0x16f   :  { %1637 = vmatmul.mubr.bf16.vlgmr.msra.gmra.mrb[0].mxu1 %v518_v13 }
 0x170   :  { %1646 = vmatprep.mubr.bf16.mxu1 %v2381_v40 }
 0x177   :  { %1647 = vmatmul.mubr.bf16.gmra.mrb[4].mxu1 %v527_v9 }
 0x202   :  { %v1479_v44 = vpop.f32.mrb[36].mxu0 }
 0x203   :  { %v1481_v45 = vpop.f32.mrb[37].mxu0 }
 0x204   :  { %v1483_v46 = vpop.f32.mrb[38].mxu0 }
 0x205   :  { %v1485_v47 = vpop.f32.mrb[39].mxu0 }
 0x20a   :  { %v1489_v48 = vpop.f32.mrb[40].mxu0 }
 0x20b   :  { %v1491_v49 = vpop.f32.mrb[41].mxu0 }
 0x20c   :  { %v1493_v50 = vpop.f32.mrb[42].mxu0 }
 0x20d   :  { %v1495_v51 = vpop.f32.mrb[43].mxu0 }
 0x242   :  { %v1638_v52 = vpop.f32.mrb[0].mxu1 }
 0x243   :  { %v2104_v53 = vadd.f32 %v1638_v52, %v1479_v44  ;;  %v1640_v54 = vpop.f32.mrb[1].mxu1 }
 0x244   :  { %v2105_v55 = vadd.f32 %v1640_v54, %v1481_v45  ;;  %v1642_v56 = vpop.f32.mrb[2].mxu1 }
 0x245   :  { %v2106_v57 = vadd.f32 %v1642_v56, %v1483_v46  ;;  %v1644_v58 = vpop.f32.mrb[3].mxu1 }
 0x246   :  { %v2107_v60 = vadd.f32 %v1644_v58, %v1485_v47 }
 0x247   :  { %v1657_v61 = vadd.f32 %v2106_v57, %v2104_v53 }
 0x248   :  { %v1666_v4 = vadd.f32 %v2107_v60, %v2105_v55 }
 0x24a   :  { %v1648_v59 = vpop.f32.mrb[4].mxu1 }
 0x24b   :  { %v2108_v5 = vadd.f32 %v1648_v59, %v1489_v48  ;;  %v1650_v6 = vpop.f32.mrb[5].mxu1 }
 0x24c   :  { %v2109_v7 = vadd.f32 %v1650_v6, %v1491_v49  ;;  %v1652_v8 = vpop.f32.mrb[6].mxu1 }
 0x24d   :  { %v1658_v9 = vadd.f32 %v2108_v5, %v1657_v61  ;;  %v2110_v10 = vadd.f32 %v1652_v8, %v1493_v50  ;;  %v1654_v11 = vpop.f32.mrb[7].mxu1 }
 0x24e   :  { %v1667_v13 = vadd.f32 %v2109_v7, %v1666_v4  ;;  %v2111_v14 = vadd.f32 %v1654_v11, %v1495_v51 }
 0x24f   :  { %v1659_v15 = vadd.f32 %v2110_v10, %v1658_v9  ;;  %v1745_v9 = vld [vmem:[%s3051_s4] sm:$0x3] }
 0x250   :  { %v1668_v19 = vadd.f32 %v2111_v14, %v1667_v13 }
 0x251   :  { %v1660_v24 = vrot.slane %v1659_v15, 4 }
 0x252   :  { %v1669_v25 = vrot.slane %v1668_v19, 4 }
 0x253   :  { %v1661_v27 = vadd.f32 %v1660_v24, %v1659_v15 }
 0x254   :  { %v1670_v28 = vadd.f32 %v1669_v25, %v1668_v19 }
 0x255   :  { %v1662_v29 = vrot.slane %v1661_v27, 2 }
 0x256   :  { %v1671_v30 = vrot.slane %v1670_v28, 2 }
 0x257   :  { %v1663_v0 = vadd.f32 %v1662_v29, %v1661_v27 }
 0x258   :  { %v1672_v1 = vadd.f32 %v1671_v30, %v1670_v28 }
 0x259   :  { %v1664_v3 = vrot.slane %v1663_v0, 1 }
 0x25a   :  { %v1673_v16 = vrot.slane %v1672_v1, 1 }
 0x25b   :  { %v1665_v17 = vadd.f32 %v1664_v3, %v1663_v0 }
 0x25c   :  { %v1674_v62 = vadd.f32 %v1673_v16, %v1672_v1 }
 0x25d   :  { %v1675_v63 = vmul.f32 0.03125, %v1665_v17 }
 0x25e   :  { %v1676_v2 = vmul.f32 0.03125, %v1674_v62 }
 0x25f   :  { %v1677_v20 = vsub.f32 %v2104_v53, %v1675_v63  ;;  %v1679_v31 = vsub.f32 %v2106_v57, %v1675_v63  ;;  %v1681_v32 = vsub.f32 %v2108_v5, %v1675_v63  ;;  %v1683_v33 = vsub.f32 %v2110_v10, %v1675_v63 }
 0x260   :  { %v1678_v36 = vsub.f32 %v2105_v55, %v1676_v2  ;;  %v1680_v37 = vsub.f32 %v2107_v60, %v1676_v2  ;;  %v1682_v39 = vsub.f32 %v2109_v7, %v1676_v2  ;;  %v1684_v41 = vsub.f32 %v2111_v14, %v1676_v2  ;;  %v1713_v7 = vld [vmem:[%s3050_s3] sm:$0x3] }
 0x261   :  { %v1685_v18 = vmul.f32 %v1677_v20, %v1677_v20  ;;  %v1687_v22 = vmul.f32 %v1679_v31, %v1679_v31  ;;  %v1689_v42 = vmul.f32 %v1681_v32, %v1681_v32  ;;  %v1691_v23 = vmul.f32 %v1683_v33, %v1683_v33 }
 0x262   :  { %v1686_v26 = vmul.f32 %v1678_v36, %v1678_v36  ;;  %v1688_v40 = vmul.f32 %v1680_v37, %v1680_v37  ;;  %v1690_v12 = vmul.f32 %v1682_v39, %v1682_v39  ;;  %v1692_v38 = vmul.f32 %v1684_v41, %v1684_v41 }
 0x263   :  { %v1693_v34 = vadd.f32 %v1687_v22, %v1685_v18  ;;  %v1727_v60 = vlaneseq }
 0x264   :  { %v1702_v21 = vadd.f32 %v1688_v40, %v1686_v26 }
 0x265   :  { %v1694_v35 = vadd.f32 %v1693_v34, %v1689_v42  ;;  %v3014_v5 = vshrl.u32 %v1727_v60, 7 }
 0x266   :  { %v1703_v43 = vadd.f32 %v1702_v21, %v1690_v12 }
 0x267   :  { %v1695_v44 = vadd.f32 %v1694_v35, %v1691_v23  ;;  %v1729_v6 = vsub.s32 0, %v3014_v5  ;;  %v1733_v8 = vsub.s32 1, %v3014_v5 }
 0x268   :  { %v1704_v45 = vadd.f32 %v1703_v43, %v1692_v38 }
 0x269   :  { %v1696_v46 = vrot.slane %v1695_v44, 4  ;;  %v1730_v10 = vrot.slane %v1713_v7, %v1729_v6  ;;  %v1750_v13 = vrot.slane %v1745_v9, %v1729_v6  ;;  %v1734_v14 = vrot.slane %v1713_v7, %v1733_v8 }
 0x26a   :  { %v1705_v47 = vrot.slane %v1704_v45, 4  ;;  %v1754_v15 = vrot.slane %v1745_v9, %v1733_v8 }
 0x26b   :  { %v1697_v48 = vadd.f32 %v1696_v46, %v1695_v44 }
 0x26c   :  { %v1706_v49 = vadd.f32 %v1705_v47, %v1704_v45 }
 0x26d   :  { %v1698_v50 = vrot.slane %v1697_v48, 2 }
 0x26e   :  { %v1707_v51 = vrot.slane %v1706_v49, 2 }
 0x26f   :  { %v1699_v52 = vadd.f32 %v1698_v50, %v1697_v48  ;;  %v1791_v50 = vld [vmem:[%s3052_s5 + $0x10] sm:$0xff] }
 0x270   :  { %v1708_v53 = vadd.f32 %v1707_v51, %v1706_v49  ;;  %v1792_v51 = vld [vmem:[%s3052_s5 + $0x18] sm:$0xff] }
 0x271   :  { %v1700_v54 = vrot.slane %v1699_v52, 1 }
 0x272   :  { %v1709_v55 = vrot.slane %v1708_v53, 1 }
 0x273   :  { %v1701_v56 = vadd.f32 %v1700_v54, %v1699_v52 }
 0x274   :  { %v1710_v57 = vadd.f32 %v1709_v55, %v1708_v53 }
 0x275   :  { %v1711_v58 = vmul.f32 0.03125, %v1701_v56 }
 0x276   :  { %v1712_v61 = vmul.f32 0.03125, %v1710_v57 }
 0x277   :  { %v1714_v4 = vadd.f32 1e-05, %v1711_v58 }
 0x278   :  { %v1715_v59 = vadd.f32 1e-05, %v1712_v61 }
 0x279   :  { %2373 = vrsqrt.f32 %v1714_v4 }
 0x27a   :  { %2375 = vrsqrt.f32 %v1715_v59 }
 0x283   :  { %v2374_v11 = vpop.eup %2373 }
 0x284   :  { %v2376_v19 = vpop.eup %2375  ;;  %v1724_v24 = vmul.f32 %v2374_v11, %v1683_v33  ;;  %v1722_v25 = vmul.f32 %v2374_v11, %v1681_v32  ;;  %v1718_v27 = vmul.f32 %v2374_v11, %v1677_v20  ;;  %v1720_v28 = vmul.f32 %v2374_v11, %v1679_v31  ;;  %v1789_v20 = vld [vmem:[%s3052_s5] sm:$0xff]  ;;  %v1790_v31 = vld [vmem:[%s3052_s5 + $0x8] sm:$0xff] }
 0x285   :  { %v1725_v29 = vmul.f32 %v2376_v19, %v1684_v41  ;;  %v1723_v30 = vmul.f32 %v2376_v19, %v1682_v39  ;;  %v1719_v0 = vmul.f32 %v2376_v19, %v1678_v36  ;;  %v1721_v1 = vmul.f32 %v2376_v19, %v1680_v37 }
 0x286   :  { %v1743_v3 = vmul.f32 %v1730_v10, %v1724_v24  ;;  %v1741_v16 = vmul.f32 %v1730_v10, %v1722_v25  ;;  %v1737_v17 = vmul.f32 %v1730_v10, %v1718_v27  ;;  %v1739_v62 = vmul.f32 %v1730_v10, %v1720_v28 }
 0x287   :  { %v1744_v63 = vmul.f32 %v1734_v14, %v1725_v29  ;;  %v1742_v2 = vmul.f32 %v1734_v14, %v1723_v30  ;;  %v1738_v18 = vmul.f32 %v1734_v14, %v1719_v0  ;;  %v1740_v22 = vmul.f32 %v1734_v14, %v1721_v1 }
 0x288   :  { %v1763_v26 = vadd.f32 %v1750_v13, %v1743_v3  ;;  %v1761_v40 = vadd.f32 %v1750_v13, %v1741_v16  ;;  %v1757_v42 = vadd.f32 %v1750_v13, %v1737_v17  ;;  %v1759_v34 = vadd.f32 %v1750_v13, %v1739_v62 }
 0x289   :  { %v1764_v33 = vadd.f32 %v1754_v15, %v1744_v63  ;;  %v1762_v32 = vadd.f32 %v1754_v15, %v1742_v2  ;;  %v1758_v36 = vadd.f32 %v1754_v15, %v1738_v18  ;;  %v1760_v37 = vadd.f32 %v1754_v15, %v1740_v22 }
 0x28a   :  { %vm1769_vm5 = vcmp.ge.f32.partialorder %v1761_v40, 0.0  ;;  %v1777_v39 = vmul.f32 0.2, %v1761_v40  ;;  %vm1765_vm6 = vcmp.ge.f32.partialorder %v1757_v42, 0.0  ;;  %v1773_v41 = vmul.f32 0.2, %v1757_v42 }
 0x28b   :  { %vm1770_vm7 = vcmp.ge.f32.partialorder %v1762_v32, 0.0  ;;  %v1778_v12 = vmul.f32 0.2, %v1762_v32  ;;  %vm1766_vm8 = vcmp.ge.f32.partialorder %v1758_v36, 0.0  ;;  %v1774_v21 = vmul.f32 0.2, %v1758_v36 }
 0x28c   :  { %v1785_v23 = vsel %vm1769_vm5, %v1761_v40, %v1777_v39  ;;  %v1781_v35 = vsel %vm1765_vm6, %v1757_v42, %v1773_v41  ;;  %vm1771_vm9 = vcmp.ge.f32.partialorder %v1763_v26, 0.0  ;;  %vm1772_vm10 = vcmp.ge.f32.partialorder %v1764_v33, 0.0 }
 0x28d   :  { %v1786_v38 = vsel %vm1770_vm7, %v1762_v32, %v1778_v12  ;;  %v1797_v43 = vmul.f32 %v1789_v20, %v1785_v23  ;;  %v1782_v44 = vsel %vm1766_vm8, %v1758_v36, %v1774_v21  ;;  %v1793_v45 = vmul.f32 %v1789_v20, %v1781_v35 }
 0x28e   :  { %v1798_v46 = vmul.f32 %v1790_v31, %v1786_v38  ;;  %v1794_v47 = vmul.f32 %v1790_v31, %v1782_v44  ;;  %v1779_v48 = vmul.f32 0.2, %v1763_v26  ;;  %v1780_v49 = vmul.f32 0.2, %v1764_v33 }
 0x28f   :  { %vm1767_vm11 = vcmp.ge.f32.partialorder %v1759_v34, 0.0  ;;  %vm1768_vm12 = vcmp.ge.f32.partialorder %v1760_v37, 0.0  ;;  %v1775_v52 = vmul.f32 0.2, %v1759_v34  ;;  %v1776_v53 = vmul.f32 0.2, %v1760_v37 }
 0x290   :  { %v1807_v54 = vadd.f32 %v1798_v46, %v1797_v43  ;;  %v1801_v55 = vadd.f32 %v1794_v47, %v1793_v45  ;;  %v1787_v56 = vsel %vm1771_vm9, %v1763_v26, %v1779_v48  ;;  %v1788_v57 = vsel %vm1772_vm10, %v1764_v33, %v1780_v49 }
 0x291   :  { %v1799_v58 = vmul.f32 %v1791_v50, %v1787_v56  ;;  %v1800_v61 = vmul.f32 %v1792_v51, %v1788_v57  ;;  %v1783_v4 = vsel %vm1767_vm11, %v1759_v34, %v1775_v52  ;;  %v1784_v59 = vsel %vm1768_vm12, %v1760_v37, %v1776_v53 }
 0x292   :  { %1808 = vadd.xlane.f32.xlu1 %v1807_v54  ;;  %1802 = vadd.xlane.f32.xlu0 %v1801_v55  ;;  %v1795_v6 = vmul.f32 %v1791_v50, %v1783_v4  ;;  %v1796_v7 = vmul.f32 %v1792_v51, %v1784_v59  ;;  %v1818_v10 = vand.u32 127, %v1727_v60  ;;  %v1847_v16 = vstv %s3053_s6 }
 0x293   :  { %v1810_v8 = vadd.f32 %v1800_v61, %v1799_v58 }
 0x294   :  { %v1804_v9 = vadd.f32 %v1796_v7, %v1795_v6  ;;  %v1823_v11 = vadd.s32 4294967288, %v1818_v10  ;;  %v1821_v15 = vsub.s32 %v1818_v10, %v3014_v5 }
 0x296   :  { %1811 = vadd.xlane.f32.xlu1 %v1810_v8  ;;  %1805 = vadd.xlane.f32.xlu0 %v1804_v9  ;;  %v1826_v19 = vsub.s32 %v1823_v11, %v3014_v5 }
 0x31f   :  { %v1809_v13 = vpop.xlane.xlu1 %1808  ;;  %v1803_v14 = vpop.xlane.xlu0 %1802 }
 0x320   :  { %v1833_v27 = vrot.slane %v1809_v13, %v1821_v15  ;;  %v1822_v28 = vrot.slane %v1803_v14, %v1821_v15 }
 0x323   :  { %v1812_v24 = vpop.xlane.xlu1 %1811  ;;  %v1806_v25 = vpop.xlane.xlu0 %1805 }
 0x324   :  { %v1837_v29 = vrot.slane %v1812_v24, %v1826_v19  ;;  %v1827_v30 = vrot.slane %v1806_v25, %v1826_v19 }
 0x326   :  { %v1829_v0 = vsel %vm1828_vm13, %v1827_v30, %v1822_v28  ;;  %v1838_v1 = vsel %vm1828_vm13, %v1837_v29, %v1833_v27 }
 0x327   :  { %v1840_v3 = vsel %vm1839_vm14, %v1838_v1, %v1829_v0 }
 0x328   :  { %v1843_v60 = vsel %vm1842_vm15, %v1840_v3, 0.0 }
 0x329   :  { %1844 = vadd.xlane.f32.xlu0 %v1843_v60 }
 0x3b6   :  { %v1845_v17 = vpop.xlane.xlu0 %1844 }
 0x3b7   :  { %v1848_v5 = vadd.f32 %v1847_v16, %v1845_v17 }
 0x3b9   :  { %v2043_v62 = vmul.f32 -1.442695, %v1848_v5 }
 0x3bb   :  { %2377 = vpow2.f32 %v2043_v62 }
 0x3c5   :  { %v2378_v63 = vpop.eup %2377 }
 0x3c6   :  { %v1852_v2 = vadd.f32 1.0, %v2378_v63 }
 0x3c8   :  { %2379 = vrcp.f32 %v1852_v2 }
 0x3d2   :  { %v2380_v18 = vpop.eup %2379 }
 0x3d3   :  { %1856 = vst.msk [vmem:[%s3054_s7] sm:$0x3] %vm1855_vm0, %v2380_v18 }

</bundles_post_ra>
